<compile_context>
chip_gen: v6e
topology: v6e:2x2x1
jax: 0.10.0
libtpu: 0.0.40
codegen_flags: <defaults>
</compile_context>

<pallas_src>
import functools
import math

import jax
import jax.numpy as jnp
from jax import lax
from jax.experimental import pallas as pl
from jax.experimental.pallas import tpu as pltpu


# ---------------------------------------------------------------------------
# Hardware queries & sizing helpers (generation-aware).
# ---------------------------------------------------------------------------
def _tpu_vmem_capacity_bytes():
    try:
        cap = getattr(pltpu.get_tpu_info(), "vmem_capacity_bytes", None)
        if cap:
            return int(cap)
    except Exception:
        pass
    return 64 * 1024 * 1024          # conservative default: v7x per-TC VMEM


def _device_kind():
    try:
        return jax.devices()[0].device_kind.lower()
    except Exception:
        return ""


def _largest_divisor_leq(n, cap):
    for g in range(min(cap, n), 0, -1):
        if n % g == 0:
            return g
    return 1


def _ceil_to(x, m):
    return ((x + m - 1) // m) * m


def _vmem_need_bytes(G, TQ, TK, Dk, Dv, in_isz, out_isz, kv_bufs):
    """VMEM footprint estimate: multi-buffered blocks + lane-padded scratch."""
    def blk(g, s, d, isz, bufs):
        return g * _ceil_to(max(s, 1), 8) * _ceil_to(max(d, 1), 128) * isz * bufs
    need = 0
    need += blk(G, TQ, Dk, in_isz, 2)            # q block (double buffered)
    need += blk(G, TK, Dk, in_isz, kv_bufs)      # k block
    need += blk(G, TK, Dv, in_isz, kv_bufs)      # v block
    need += blk(G, TQ, Dv, out_isz, 2)           # output block
    need += blk(G, 1, TK, 4, 2)                  # fused last-row score block (f32)
    need += 2 * blk(G, TQ, 1, 4, 1)              # m / l scratch (lane-pad 1 -> 128)
    need += blk(G, TQ, Dv, 4, 1)                 # f32 output accumulator scratch
    return need


def _maybe_buffered_spec(shape, index_map, buffer_count):
    if buffer_count > 2:
        try:
            return pl.BlockSpec(shape, index_map,
                                pipeline_mode=pl.Buffered(buffer_count))
        except Exception:          # older jax: no pipeline_mode / Buffered
            pass
    return pl.BlockSpec(shape, index_map)


# ---------------------------------------------------------------------------
# Kernel.
# ---------------------------------------------------------------------------
def _flash_sdpa_kernel(q_ref, k_ref, v_ref, out_ref, attn_ref,
                       m_scr, l_scr, acc_scr,
                       *, score_scale, last_q_row, kv_len, exp_bf16):
    ki = pl.program_id(2)

    @pl.when(ki == 0)
    def _init():
        m_scr[...] = jnp.full(m_scr.shape, -jnp.inf, jnp.float32)
        l_scr[...] = jnp.zeros(l_scr.shape, jnp.float32)
        acc_scr[...] = jnp.zeros(acc_scr.shape, jnp.float32)

    q = q_ref[...]      # (G, TQ, Dk) native dtype
    k = k_ref[...]      # (G, TK, Dk)
    v = v_ref[...]      # (G, TK, Dv)

    # Scores for this KV tile: contract last dims directly (no k.T), f32 accumulate.
    s = jnp.einsum("gqd,gkd->gqk", q, k,
                   preferred_element_type=jnp.float32) * score_scale
    # TODO(synk): attn_mask / training-mode dropout not implemented (both are
    # identity for the module defaults: attn_mask=None, eval-mode dropout).

    if kv_len is not None:
        # Padded KV columns (col >= kv_len) must not participate in the softmax.
        tk = k_ref.shape[1]
        col = ki * tk + lax.broadcasted_iota(jnp.int32, s.shape, 2)
        s = jnp.where(col < kv_len, s, -jnp.inf)

    # Fused second output: pre-softmax scores of the LAST query row for this KV tile.
    # Written on every (qi, ki); the final qi pass (which holds global row Sq-1 at
    # local index `last_q_row`) is written back last (qi axis is sequential per core),
    # so HBM ends up with the correct values.
    attn_ref[...] = s[:, last_q_row:last_q_row + 1, :]

    # Online (flash) softmax update, statistics in f32.
    m_prev = m_scr[...]
    m_new = jnp.maximum(m_prev, jnp.max(s, axis=-1, keepdims=True))
    alpha = jnp.exp(m_prev - m_new)
    if exp_bf16:
        # v6e/v7x bf16 EUP path: exp in bf16, feed p straight to the PV matmul.
        p = jnp.exp((s - m_new).astype(jnp.bfloat16))
        p_mm = p
        row_sum = jnp.sum(p.astype(jnp.float32), axis=-1, keepdims=True)
    else:
        p = jnp.exp(s - m_new)
        p_mm = p.astype(v.dtype)
        row_sum = jnp.sum(p, axis=-1, keepdims=True)
    l_scr[...] = alpha * l_scr[...] + row_sum
    acc_scr[...] = alpha * acc_scr[...] + jnp.einsum(
        "gqk,gkd->gqd", p_mm, v, preferred_element_type=jnp.float32)
    m_scr[...] = m_new

    @pl.when(ki == pl.num_programs(2) - 1)
    def _finalize():
        # Exact normalization (runs once per (bh, qi) tile, so approx reciprocal
        # would only add error for no gain).
        out_ref[...] = (acc_scr[...] / l_scr[...]).astype(out_ref.dtype)


# ---------------------------------------------------------------------------
# Wrapper.
# ---------------------------------------------------------------------------
def scaled_dot_product_attention(q, k, v, scale=None, attn_mask=None,
                                 *, max_q_tile=None, max_kv_tile=None):
    """q: [B,H,Sq,Dk], k: [B,H,Sk,Dk], v: [B,H,Sk,Dv]
    -> (output [B,H,Sq,Dv], attn [B,H,Sk])  (attn = pre-softmax scores of last query)."""
    if attn_mask is not None:
        # TODO(synk): attn_mask (masked_fill with -inf) not implemented; module default is None.
        raise NotImplementedError("attn_mask is not supported")

    B, H, Sq, Dk = q.shape
    Sk = k.shape[2]
    Dv = v.shape[-1]
    BH = B * H

    qf = q.reshape(BH, Sq, Dk)
    kf = k.reshape(BH, Sk, Dk)
    vf = v.reshape(BH, Sk, Dv)

    in_isz = jnp.dtype(q.dtype).itemsize
    out_isz = in_isz

    vmem_cap = _tpu_vmem_capacity_bytes()
    kind = _device_kind()
    big_vmem = vmem_cap >= (100 << 20)           # v5e / v6e: 128 MiB per core
    if big_vmem or in_isz <= 2:
        tq_cap, tk_cap = 512, 1024
    else:                                        # 64-MiB class (v7x) with f32 inputs
        tq_cap, tk_cap = 256, 512
    if max_q_tile is not None:
        tq_cap = min(tq_cap, max_q_tile)
    if max_kv_tile is not None:
        tk_cap = min(tk_cap, max_kv_tile)

    # Head-batch size G: keep >= 2 bh blocks whenever possible so v7x's second
    # TensorCore gets work (bh is the only "parallel" grid axis).
    g_cap = 16 if BH < 2 else min(16, BH // 2)
    G = _largest_divisor_leq(BH, max(1, g_cap))

    # cdiv-based tiling with padded/masked tails (no full-dim fallback for big dims).
    TQ = Sq if Sq <= tq_cap else tq_cap
    TK = Sk if Sk <= tk_cap else tk_cap

    kv_bufs = 3 if ("v5" in kind and pl.cdiv(Sk, TK) >= 3) else 2

    # Shrink tiles (128-aligned) until the explicit VMEM footprint fits the budget.
    budget = int(0.7 * vmem_cap)
    while _vmem_need_bytes(G, TQ, TK, Dk, Dv, in_isz, out_isz, kv_bufs) > budget:
        if TK > 128:
            TK = max(128, (TK // 2) // 128 * 128)
        elif TQ > 128:
            TQ = max(128, (TQ // 2) // 128 * 128)
        elif G > 1:
            G = max(1, G // 2)
        else:
            break

    Sq_pad = pl.cdiv(Sq, TQ) * TQ
    Sk_pad = pl.cdiv(Sk, TK) * TK
    if Sq_pad != Sq:
        qf = jnp.pad(qf, ((0, 0), (0, Sq_pad - Sq), (0, 0)))
    if Sk_pad != Sk:
        kf = jnp.pad(kf, ((0, 0), (0, Sk_pad - Sk), (0, 0)))
        vf = jnp.pad(vf, ((0, 0), (0, Sk_pad - Sk), (0, 0)))

    grid = (BH // G, Sq_pad // TQ, Sk_pad // TK)
    last_q_row = (Sq - 1) % TQ            # local index of global row Sq-1 in the last Q tile

    # Fold 1/sqrt(dk) and the optional scale into one static multiplier
    # (Python truthiness, matching the module's `if scale:`).
    score_scale = (1.0 / math.sqrt(Dk)) * (float(scale) if scale else 1.0)

    exp_bf16 = (q.dtype == jnp.bfloat16 and v.dtype == jnp.bfloat16
                and any(g in kind for g in ("v6", "v7")))

    need = _vmem_need_bytes(G, TQ, TK, Dk, Dv, in_isz, out_isz, kv_bufs)
    vmem_limit = int(min(int(0.9 * vmem_cap),
                         max(32 << 20, int(need * 1.5) + (2 << 20))))

    cost = pl.CostEstimate(
        flops=2 * BH * Sq_pad * Sk_pad * (Dk + Dv),
        transcendentals=BH * Sq_pad * Sk_pad,
        bytes_accessed=(int(qf.size)
                        + (Sq_pad // TQ) * (int(kf.size) + int(vf.size))
                        + BH * Sq_pad * Dv) * in_isz + BH * Sk_pad * 4,
    )

    # qi axis is "arbitrary" (not "parallel") on purpose: the fused last-row score
    # output block is revisited across qi and relies on in-order per-core writeback.
    compiler_params = pltpu.CompilerParams(
        dimension_semantics=("parallel", "arbitrary", "arbitrary"),
        vmem_limit_bytes=vmem_limit,
    )

    kernel = functools.partial(
        _flash_sdpa_kernel,
        score_scale=score_scale,
        last_q_row=last_q_row,
        kv_len=(Sk if Sk_pad != Sk else None),
        exp_bf16=exp_bf16,
    )

    # TODO(synk): when Dv < 128, repack the out block (TQ, Dv) -> TQ*Dv for lane-dense
    # (unmasked) stores; skipped here to avoid an in-kernel relayout.
    out_pad, attn_pad = pl.pallas_call(
        kernel,
        out_shape=(
            jax.ShapeDtypeStruct((BH, Sq_pad, Dv), q.dtype),
            jax.ShapeDtypeStruct((BH, 1, Sk_pad), jnp.float32),
        ),
        grid_spec=pltpu.PrefetchScalarGridSpec(
            num_scalar_prefetch=0,
            grid=grid,
            in_specs=[
                pl.BlockSpec((G, TQ, Dk), lambda bh, qi, ki: (bh, qi, 0)),
                _maybe_buffered_spec((G, TK, Dk), lambda bh, qi, ki: (bh, ki, 0), kv_bufs),
                _maybe_buffered_spec((G, TK, Dv), lambda bh, qi, ki: (bh, ki, 0), kv_bufs),
            ],
            out_specs=[
                pl.BlockSpec((G, TQ, Dv), lambda bh, qi, ki: (bh, qi, 0)),
                pl.BlockSpec((G, 1, TK), lambda bh, qi, ki: (bh, 0, ki)),
            ],
            scratch_shapes=[
                pltpu.VMEM((G, TQ, 1), jnp.float32),    # running max m
                pltpu.VMEM((G, TQ, 1), jnp.float32),    # running sum l
                pltpu.VMEM((G, TQ, Dv), jnp.float32),   # output accumulator
            ],
        ),
        compiler_params=compiler_params,
        cost_estimate=cost,
    )(qf, kf, vf)

    out = out_pad[:, :Sq, :].reshape(B, H, Sq, Dv)
    attn = attn_pad[:, 0, :Sk].reshape(B, H, Sk)
    return out, attn


# ---------------------------------------------------------------------------
# Pure-JAX reference.
# ---------------------------------------------------------------------------
def _reference(q, k, v, scale=None):
    dk = q.shape[-1]
    attn = jnp.einsum("bhqd,bhkd->bhqk",
                      q.astype(jnp.float32), k.astype(jnp.float32)) / math.sqrt(dk)
    if scale:
        attn = attn * scale
    p = jax.nn.softmax(attn, axis=-1)
    out = jnp.einsum("bhqk,bhkd->bhqd", p, v.astype(jnp.float32))
    return out.astype(q.dtype), attn[:, :, -1]


if __name__ == "__main__":
    # Small shapes consistent with the module's 4-D [B, H, S, D] inputs.
    B, H, S, D = 2, 4, 8, 32
    kq, kk, kv_ = jax.random.split(jax.random.PRNGKey(0), 3)
    q = jax.random.normal(kq, (B, H, S, D), dtype=jnp.float32)
    k = jax.random.normal(kk, (B, H, S, D), dtype=jnp.float32)
    v = jax.random.normal(kv_, (B, H, S, D), dtype=jnp.float32)

    out, attn_last = scaled_dot_product_attention(q, k, v)
    jax.block_until_ready((out, attn_last))
    ref_out, ref_attn = _reference(q, k, v)
    assert out.shape == (B, H, S, D) and attn_last.shape == (B, H, S)
    assert jnp.allclose(out, ref_out, atol=2e-3, rtol=2e-3)
    assert jnp.allclose(attn_last, ref_attn, atol=2e-3, rtol=2e-3)

    # Exercise the `scale` path (Python truthiness, matching the module).
    out_s, attn_s = scaled_dot_product_attention(q, k, v, scale=0.5)
    jax.block_until_ready((out_s, attn_s))
    ref_out_s, ref_attn_s = _reference(q, k, v, scale=0.5)
    assert jnp.allclose(out_s, ref_out_s, atol=2e-3, rtol=2e-3)
    assert jnp.allclose(attn_s, ref_attn_s, atol=2e-3, rtol=2e-3)

    # Exercise the multi-tile, padded/masked-tail and fused last-row path by forcing
    # small tiles (Sq = Sk = 320 pads to 384 with TQ = TK = 128).
    B2, H2, S2, D2 = 1, 2, 320, 64
    kq2, kk2, kv2 = jax.random.split(jax.random.PRNGKey(1), 3)
    q2 = jax.random.normal(kq2, (B2, H2, S2, D2), dtype=jnp.float32)
    k2 = jax.random.normal(kk2, (B2, H2, S2, D2), dtype=jnp.float32)
    v2 = jax.random.normal(kv2, (B2, H2, S2, D2), dtype=jnp.float32)
    out2, attn2 = scaled_dot_product_attention(q2, k2, v2,
                                               max_q_tile=128, max_kv_tile=128)
    jax.block_until_ready((out2, attn2))
    ref_out2, ref_attn2 = _reference(q2, k2, v2)
    assert jnp.allclose(out2, ref_out2, atol=2e-3, rtol=2e-3)
    assert jnp.allclose(attn2, ref_attn2, atol=2e-3, rtol=2e-3)

    print("KERNEL_OK")
</pallas_src>

<mosaic_0001>
module attributes {stable_mosaic.version = 11 : i64} {
  func.func @_flash_sdpa_kernel(%arg0: i32, %arg1: i32, %arg2: i32, %arg3: memref<4x8x32xf32, #tpu.memory_space<vmem>>, %arg4: memref<4x8x32xf32, #tpu.memory_space<vmem>>, %arg5: memref<4x8x32xf32, #tpu.memory_space<vmem>>, %arg6: memref<4x8x32xf32, #tpu.memory_space<vmem>>, %arg7: memref<4x1x8xf32, #tpu.memory_space<vmem>>, %arg8: memref<4x8x1xf32, #tpu.memory_space<vmem>>, %arg9: memref<4x8x1xf32, #tpu.memory_space<vmem>>, %arg10: memref<4x8x32xf32, #tpu.memory_space<vmem>>) attributes {dimension_semantics = [#tpu.dimension_semantics<parallel>, #tpu.dimension_semantics<arbitrary>, #tpu.dimension_semantics<arbitrary>], iteration_bounds = array<i64: 2, 1, 1>, scalar_prefetch = 0 : i64, scratch_operands = 3 : i64, tpu.core_type = #tpu.core_type<tc>, window_params = [{transform_indices = @transform_0, window_bounds = array<i64: 4, 8, 32>}, {transform_indices = @transform_1, window_bounds = array<i64: 4, 8, 32>}, {transform_indices = @transform_2, window_bounds = array<i64: 4, 8, 32>}, {transform_indices = @transform_3, window_bounds = array<i64: 4, 8, 32>}, {transform_indices = @transform_4, window_bounds = array<i64: 4, 1, 8>}]} {
    %c0_i32 = arith.constant 0 : i32
    %0 = arith.cmpi eq, %arg2, %c0_i32 : i32
    %1 = arith.extui %0 : i1 to i32
    %c0_i32_0 = arith.constant 0 : i32
    %2 = arith.cmpi ne, %1, %c0_i32_0 : i32
    scf.if %2 {
      %cst_36 = arith.constant 0xFF800000 : f32
      %36 = vector.broadcast %cst_36 : f32 to vector<4x8x1xf32>
      %c0_37 = arith.constant 0 : index
      %c0_38 = arith.constant 0 : index
      %c0_39 = arith.constant 0 : index
      %37 = vector.load %arg8[%c0_37, %c0_38, %c0_39] : memref<4x8x1xf32, #tpu.memory_space<vmem>>, vector<4x8x1xf32>
      tpu.vector_store %arg8[%c0_37, %c0_38, %c0_39], %36 {strides = array<i32>} : memref<4x8x1xf32, #tpu.memory_space<vmem>>, vector<4x8x1xf32>,
      %cst_40 = arith.constant 0.000000e+00 : f32
      %38 = vector.broadcast %cst_40 : f32 to vector<4x8x1xf32>
      %c0_41 = arith.constant 0 : index
      %c0_42 = arith.constant 0 : index
      %c0_43 = arith.constant 0 : index
      %39 = vector.load %arg9[%c0_41, %c0_42, %c0_43] : memref<4x8x1xf32, #tpu.memory_space<vmem>>, vector<4x8x1xf32>
      tpu.vector_store %arg9[%c0_41, %c0_42, %c0_43], %38 {strides = array<i32>} : memref<4x8x1xf32, #tpu.memory_space<vmem>>, vector<4x8x1xf32>,
      %cst_44 = arith.constant 0.000000e+00 : f32
      %40 = vector.broadcast %cst_44 : f32 to vector<4x8x32xf32>
      %c0_45 = arith.constant 0 : index
      %c0_46 = arith.constant 0 : index
      %c0_47 = arith.constant 0 : index
      %41 = vector.load %arg10[%c0_45, %c0_46, %c0_47] : memref<4x8x32xf32, #tpu.memory_space<vmem>>, vector<4x8x32xf32>
      tpu.vector_store %arg10[%c0_45, %c0_46, %c0_47], %40 {strides = array<i32>} : memref<4x8x32xf32, #tpu.memory_space<vmem>>, vector<4x8x32xf32>,
    } else {
    }
    %c0 = arith.constant 0 : index
    %c0_1 = arith.constant 0 : index
    %c0_2 = arith.constant 0 : index
    %3 = vector.load %arg3[%c0, %c0_1, %c0_2] : memref<4x8x32xf32, #tpu.memory_space<vmem>>, vector<4x8x32xf32>
    %c0_3 = arith.constant 0 : index
    %c0_4 = arith.constant 0 : index
    %c0_5 = arith.constant 0 : index
    %4 = vector.load %arg4[%c0_3, %c0_4, %c0_5] : memref<4x8x32xf32, #tpu.memory_space<vmem>>, vector<4x8x32xf32>
    %c0_6 = arith.constant 0 : index
    %c0_7 = arith.constant 0 : index
    %c0_8 = arith.constant 0 : index
    %5 = vector.load %arg5[%c0_6, %c0_7, %c0_8] : memref<4x8x32xf32, #tpu.memory_space<vmem>>, vector<4x8x32xf32>
    "tpu.trace_start"() <{level = 10 : i32, message = "gqd,gkd->gqk"}> : () -> ()
    %cst = arith.constant dense<0.000000e+00> : vector<4x8x8xf32>
    %6 = tpu.matmul %3, %4, %cst {dimension_numbers = #tpu.dot_dimension_numbers<[2], [2], [1], [1], [0, 0, 0, 1, 1, 1], [0], [0]>} : vector<4x8x32xf32>, vector<4x8x32xf32>, vector<4x8x8xf32> -> vector<4x8x8xf32>
    "tpu.trace_stop"() : () -> ()
    %cst_9 = arith.constant 0.176776692 : f32
    %7 = vector.broadcast %cst_9 : f32 to vector<4x8x8xf32>
    %8 = arith.mulf %6, %7 : vector<4x8x8xf32>
    %9 = vector.extract_strided_slice %8 {offsets = [0, 7, 0], sizes = [4, 1, 8], strides = [1, 1, 1]} : vector<4x8x8xf32> to vector<4x1x8xf32>
    %c0_10 = arith.constant 0 : index
    %c0_11 = arith.constant 0 : index
    %c0_12 = arith.constant 0 : index
    %10 = vector.load %arg7[%c0_10, %c0_11, %c0_12] : memref<4x1x8xf32, #tpu.memory_space<vmem>>, vector<4x1x8xf32>
    tpu.vector_store %arg7[%c0_10, %c0_11, %c0_12], %9 {strides = array<i32>} : memref<4x1x8xf32, #tpu.memory_space<vmem>>, vector<4x1x8xf32>,
    %c0_13 = arith.constant 0 : index
    %c0_14 = arith.constant 0 : index
    %c0_15 = arith.constant 0 : index
    %11 = vector.load %arg8[%c0_13, %c0_14, %c0_15] : memref<4x8x1xf32, #tpu.memory_space<vmem>>, vector<4x8x1xf32>
    %cst_16 = arith.constant dense<0xFF800000> : vector<4x8xf32>
    %12 = vector.multi_reduction <maximumf>, %8, %cst_16 [2] : vector<4x8x8xf32> to vector<4x8xf32>
    %13 = vector.shape_cast %12 : vector<4x8xf32> to vector<4x8x1xf32>
    %14 = arith.maximumf %11, %13 : vector<4x8x1xf32>
    %15 = arith.subf %11, %14 : vector<4x8x1xf32>
    %16 = math.exp %15 : vector<4x8x1xf32>
    %17 = vector.broadcast %14 : vector<4x8x1xf32> to vector<4x8x8xf32>
    %18 = arith.subf %8, %17 : vector<4x8x8xf32>
    %19 = math.exp %18 : vector<4x8x8xf32>
    %cst_17 = arith.constant dense<0.000000e+00> : vector<4x8xf32>
    %20 = vector.multi_reduction <add>, %19, %cst_17 [2] : vector<4x8x8xf32> to vector<4x8xf32>
    %21 = vector.shape_cast %20 : vector<4x8xf32> to vector<4x8x1xf32>
    %c0_18 = arith.constant 0 : index
    %c0_19 = arith.constant 0 : index
    %c0_20 = arith.constant 0 : index
    %22 = vector.load %arg9[%c0_18, %c0_19, %c0_20] : memref<4x8x1xf32, #tpu.memory_space<vmem>>, vector<4x8x1xf32>
    %23 = arith.mulf %16, %22 : vector<4x8x1xf32>
    %24 = arith.addf %23, %21 : vector<4x8x1xf32>
    %c0_21 = arith.constant 0 : index
    %c0_22 = arith.constant 0 : index
    %c0_23 = arith.constant 0 : index
    %25 = vector.load %arg9[%c0_21, %c0_22, %c0_23] : memref<4x8x1xf32, #tpu.memory_space<vmem>>, vector<4x8x1xf32>
    tpu.vector_store %arg9[%c0_21, %c0_22, %c0_23], %24 {strides = array<i32>} : memref<4x8x1xf32, #tpu.memory_space<vmem>>, vector<4x8x1xf32>,
    %c0_24 = arith.constant 0 : index
    %c0_25 = arith.constant 0 : index
    %c0_26 = arith.constant 0 : index
    %26 = vector.load %arg10[%c0_24, %c0_25, %c0_26] : memref<4x8x32xf32, #tpu.memory_space<vmem>>, vector<4x8x32xf32>
    %27 = vector.broadcast %16 : vector<4x8x1xf32> to vector<4x8x32xf32>
    %28 = arith.mulf %27, %26 : vector<4x8x32xf32>
    "tpu.trace_start"() <{level = 10 : i32, message = "gqk,gkd->gqd"}> : () -> ()
    %cst_27 = arith.constant dense<0.000000e+00> : vector<4x8x32xf32>
    %29 = tpu.matmul %19, %5, %cst_27 {dimension_numbers = #tpu.dot_dimension_numbers<[2], [1], [1], [2], [0, 0, 0, 1, 1, 2], [0], [0]>} : vector<4x8x8xf32>, vector<4x8x32xf32>, vector<4x8x32xf32> -> vector<4x8x32xf32>
    "tpu.trace_stop"() : () -> ()
    %30 = arith.addf %28, %29 : vector<4x8x32xf32>
    %c0_28 = arith.constant 0 : index
    %c0_29 = arith.constant 0 : index
    %c0_30 = arith.constant 0 : index
    %31 = vector.load %arg10[%c0_28, %c0_29, %c0_30] : memref<4x8x32xf32, #tpu.memory_space<vmem>>, vector<4x8x32xf32>
    tpu.vector_store %arg10[%c0_28, %c0_29, %c0_30], %30 {strides = array<i32>} : memref<4x8x32xf32, #tpu.memory_space<vmem>>, vector<4x8x32xf32>,
    %c0_31 = arith.constant 0 : index
    %c0_32 = arith.constant 0 : index
    %c0_33 = arith.constant 0 : index
    %32 = vector.load %arg8[%c0_31, %c0_32, %c0_33] : memref<4x8x1xf32, #tpu.memory_space<vmem>>, vector<4x8x1xf32>
    tpu.vector_store %arg8[%c0_31, %c0_32, %c0_33], %14 {strides = array<i32>} : memref<4x8x1xf32, #tpu.memory_space<vmem>>, vector<4x8x1xf32>,
    %c0_i32_34 = arith.constant 0 : i32
    %33 = arith.cmpi eq, %arg2, %c0_i32_34 : i32
    %34 = arith.extui %33 : i1 to i32
    %c0_i32_35 = arith.constant 0 : i32
    %35 = arith.cmpi ne, %34, %c0_i32_35 : i32
    scf.if %35 {
      %c0_36 = arith.constant 0 : index
      %c0_37 = arith.constant 0 : index
      %c0_38 = arith.constant 0 : index
      %36 = vector.load %arg10[%c0_36, %c0_37, %c0_38] : memref<4x8x32xf32, #tpu.memory_space<vmem>>, vector<4x8x32xf32>
      %c0_39 = arith.constant 0 : index
      %c0_40 = arith.constant 0 : index
      %c0_41 = arith.constant 0 : index
      %37 = vector.load %arg9[%c0_39, %c0_40, %c0_41] : memref<4x8x1xf32, #tpu.memory_space<vmem>>, vector<4x8x1xf32>
      %38 = vector.broadcast %37 : vector<4x8x1xf32> to vector<4x8x32xf32>
      %39 = arith.divf %36, %38 : vector<4x8x32xf32>
      %c0_42 = arith.constant 0 : index
      %c0_43 = arith.constant 0 : index
      %c0_44 = arith.constant 0 : index
      %40 = vector.load %arg6[%c0_42, %c0_43, %c0_44] : memref<4x8x32xf32, #tpu.memory_space<vmem>>, vector<4x8x32xf32>
      tpu.vector_store %arg6[%c0_42, %c0_43, %c0_44], %39 {strides = array<i32>} : memref<4x8x32xf32, #tpu.memory_space<vmem>>, vector<4x8x32xf32>,
    } else {
    }
    return
  }
  func.func @transform_0(%arg0: i32, %arg1: i32, %arg2: i32) -> (i32, i32, i32) {
    %c0_i32 = arith.constant 0 : i32
    %c0_i32_0 = arith.constant 0 : i32
    return %arg0, %arg1, %c0_i32 : i32, i32, i32
  }
  func.func @transform_1(%arg0: i32, %arg1: i32, %arg2: i32) -> (i32, i32, i32) {
    %c0_i32 = arith.constant 0 : i32
    %c0_i32_0 = arith.constant 0 : i32
    return %arg0, %arg2, %c0_i32 : i32, i32, i32
  }
  func.func @transform_2(%arg0: i32, %arg1: i32, %arg2: i32) -> (i32, i32, i32) {
    %c0_i32 = arith.constant 0 : i32
    %c0_i32_0 = arith.constant 0 : i32
    return %arg0, %arg2, %c0_i32 : i32, i32, i32
  }
  func.func @transform_3(%arg0: i32, %arg1: i32, %arg2: i32) -> (i32, i32, i32) {
    %c0_i32 = arith.constant 0 : i32
    %c0_i32_0 = arith.constant 0 : i32
    return %arg0, %arg1, %c0_i32 : i32, i32, i32
  }
  func.func @transform_4(%arg0: i32, %arg1: i32, %arg2: i32) -> (i32, i32, i32) {
    %c0_i32 = arith.constant 0 : i32
    %c0_i32_0 = arith.constant 0 : i32
    return %arg0, %c0_i32, %arg2 : i32, i32, i32
  }
}

</mosaic_0001>

<bundles_post_ra>
// kernel: tpu_custom_call.1
= control target key start
LH: loop header
LB: loop body
LE: loop exit
PB: predicated region body
PF: predicated region fallthrough
CT: control target
= control target key end

     0   :  { %s2185_s0 = inlined_call_operand.hbm [shape: f32[8,8,32], index: 0, kind: input, shape index: {}]   ;;  %s2186_s1 = inlined_call_operand.hbm [shape: f32[8,8,32], index: 1, kind: input, shape index: {}]   ;;  %s2187_s2 = inlined_call_operand.hbm [shape: f32[8,8,32], index: 2, kind: input, shape index: {}]   ;;  %s2188_s3 = inlined_call_operand.hbm [shape: f32[8,8,32], index: 3, kind: output, shape index: {0}]   ;;  %s2189_s4 = inlined_call_operand.hbm [shape: f32[8,1,8], index: 4, kind: output, shape index: {1}]  }
   0x1   :  { %2196 = sst [smem:[#allocation22_spill]] %s2186_s1 }
   0x2   :  { %10 = vsyncpa [#allocation6], 0 }
   0x3   :  { %12 = vsyncpa [#allocation6 + $0x1], 0 }
   0x4   :  { %13 = vsyncpa [#allocation9], 0 }
   0x5   :  { %15 = vsyncpa [#allocation9 + $0x1], 0 }
   0x6   :  { %16 = vsyncpa [#allocation7], 0 }
   0x7   :  { %18 = vsyncpa [#allocation7 + $0x1], 0 }
   0x8   :  { %19 = vsyncpa [#allocation13], 0 }
   0x9   :  { %21 = vsyncpa [#allocation13 + $0x1], 0  ;;  %s1813_s15 = smov 0   ;;  %s1815_s16 = smov 0  }
   0xa   :  { %s1817_s17 = smov 0   ;;  %s1819_s18 = smov 0  }
   0xb   :  { %s1821_s19 = smov 0   ;;  %s1823_s20 = smov 0  }
   0xc LB: > { %2197 = sst [smem:[#allocation18_spill]] %s1767_s19  ;;  %s1844_s21 = sadd.s32 4294967295, %s1771_s20   ;;  %s1771_s20 = sphi %s1823_s20, %s27_s20   ;;  %s1767_s19 = sphi %s1821_s19, %s2214_s19   ;;  %s1763_s18 = sphi %s1819_s18, %s2213_s18   ;;  %s1759_s17 = sphi %s1817_s17, %s2217_s17   ;;  %s1755_s16 = sphi %s1815_s16, %s2216_s16   ;;  %s1751_s15 = sphi %s1813_s15, %s2215_s15  }
   0xd   : > { %s1361_s22 = sadd.s32 4294967294, %s1771_s20   ;;  %s46_s23 = sadd.s32 1, %s1767_s19 }
   0xe   : > { %s55_s24 = sadd.s32 1, %s1759_s17  ;;  %p48_p0 = scmp.ge.s32.totalorder %s46_s23, 2 }
   0xf   : > { %p62_p1 = scmp.ne.s32.totalorder %s1759_s17, %s1755_s16  ;;  %p63_p2 = scmp.eq.s32.totalorder %s1771_s20, 0 }
  0x10   : > { %p68_p3 = scmp.ne.s32.totalorder %s1755_s16, %s1751_s15  ;;  %s2219_s23 = smov (%p48_p0, %s46_s23), 0 }
  0x11   : > { %2198 = sst [smem:[#allocation19_spill]] %s2219_s23  ;;  %p1856_p4 = por %p63_p2, %p62_p1 }
  0x12   : > { %p69_p5 = scmp.eq.s32.totalorder %s1844_s21, 0  ;;  %s50_s26 = ssub.s32 %s1767_s19, %s2219_s23 }
  0x13   : > { %p150_p6 = scmp.eq.s32.totalorder %s1844_s21, 1  ;;  %p53_p7 = scmp.eq.s32.totalorder %s50_s26, 0 }
  0x14   : > { %p1864_p8 = por %p69_p5, %p68_p3  ;;  %p156_p10 = scmp.eq.s32.totalorder %s1361_s22, 1 }
  0x15   : > { %p1868_p9 = por %p150_p6, %p62_p1  ;;  %p1487_p13 = scmp.lt.s32.totalorder %s1771_s20, 2 }
  0x16   : > { %s1873_s29 = scalar_select %p53_p7, %s1759_s17, %s55_s24  }
  0x17   : > { %p1875_p11 = por %p156_p10, %p68_p3  ;;  %s2190_s5 = sand.u32 1, %s1759_s17  }
  0x18   : > { %2202 = sst [smem:[#allocation20_spill]] %s1873_s29  ;;  %s1884_s6 = sshll.u32 %s2190_s5, 5 }
  0x19   : > { %s2203_s30 = scalar_select %p1875_p11, 1, 0 }
  0x1a   : > { %s1887_s7 = sshll.u32 %s1767_s19, 9  ;;  %p1891_p0 = pnand %p1487_p13, %p1856_p4 }
  0x1b   : > { %2204 = sst [smem:[#allocation21_spill]] %s2203_s30  ;;  %s226_s9 = sand.u32 1, %s1771_s20  }
  0x1c   : > { %s2206_s1 = sld [smem:[#allocation22_spill]]  ;;  %s230_s13 = scalar_lea.vmem [#allocation8], %s1884_s6 }
  0x1d   : > { %s238_s14 = sshll.u32 %s230_s13, 4  ;;  %p1373_p1 = scmp.ge.s32.totalorder %s1771_s20, 1  ;;  %s239_s14 = int_to_ptr.vmem [resolvable:$true] %s238_s14 }
  0x1e   : > { %p268_p2 = scmp.lt.s32.totalorder %s1771_s20, 3  ;;  %s1903_s22 = scalar_lea.sflag [#allocation9], %s226_s9 }
  0x1f   : > { %p1575_p3 = pneg %p1891_p0  ;;  %s1586_s24 = scalar_lea.vmem %s239_s14, 512 }
  0x20   : > { %p1587_p4 = scmp.ne.s32.totalorder %s239_s14, %s1586_s24  ;;  %s1773_s25 = smov [#allocation8]  }
  0x21   : > { %s1591_s26 = sshll.u32 %s1773_s25, 4  ;;  %s1592_s26 = int_to_ptr.vmem [resolvable:$false] %s1591_s26 }
  0x22   : > { %s237_s12 = scalar_lea.hbm %s2206_s1, %s1887_s7  ;;  %p1589_p5 = pnand %p1587_p4, %p1575_p3 }
  0x23   : > { %s1593_s10 = scalar_lea.vmem %s1592_s26, 1024  ;;  %p1594_p7 = scmp.lt.s32.totalorder %s239_s14, %s1592_s26 }
  0x24   : > { %p1590_p6 = pneg %p1589_p5  ;;  %p1595_p10 = scmp.lt.s32.totalorder %s1593_s10, %s1586_s24 }
  0x26   : > { %p1596_p13 = por %p1595_p10, %p1594_p7 }
  0x28   : > { %p1597_p12 = pnand %p1596_p13, %p1590_p6 }
  0x2a   : > { %1600 = shalt.err (!%p1597_p12)
}
  0x2b   : > { %s2194_s11 = smov 128   ;;  %s1775_s9 = smov 8  }
  0x2c   : > { %1476 = dma.hbm_to_vmem [thread:$0]  (!%p1891_p0), %s237_s12, 512, %s239_s14, %s1903_s22, %s2194_s11, %s2194_s11, %s1775_s9  }
  0x2d   : > { %p1920_p4 = pnand %p1373_p1, %p268_p2  ;;  %s215_s26 = scalar_lea.hbm %s2185_s0, %s1887_s7 }
  0x2e   : > { %s208_s10 = scalar_lea.vmem [#allocation5], %s1884_s6  ;;  %s259_s19 = scalar_lea.hbm %s2187_s2, %s1887_s7 }
  0x2f   : > { %s216_s5 = sshll.u32 %s208_s10, 4  ;;  %s2208_s29 = sand.u32 1, %s1759_s17   ;;  %s217_s5 = int_to_ptr.vmem [resolvable:$true] %s216_s5 }
  0x30   : > { %s205_s30 = scalar_lea.sflag [#allocation6], %s2208_s29  ;;  %s1614_s12 = scalar_lea.vmem %s217_s5, 512 }
  0x31   : > { %p1615_p12 = scmp.ne.s32.totalorder %s217_s5, %s1614_s12  ;;  %s1776_s14 = smov [#allocation5]  }
  0x32   : > { %s1619_s11 = sshll.u32 %s1776_s14, 4  ;;  %s1620_s11 = int_to_ptr.vmem [resolvable:$false] %s1619_s11 }
  0x33   : > { %p1617_p1 = pnand %p1615_p12, %p1575_p3  ;;  %s1621_s24 = scalar_lea.vmem %s1620_s11, 1024 }
  0x34   : > { %p1622_p5 = scmp.lt.s32.totalorder %s217_s5, %s1620_s11  ;;  %p1623_p6 = scmp.lt.s32.totalorder %s1621_s24, %s1614_s12 }
  0x35   : > { %p1618_p2 = pneg %p1617_p1 }
  0x36   : > { %p1624_p7 = por %p1623_p6, %p1622_p5 }
  0x38   : > { %p1625_p10 = pnand %p1624_p7, %p1618_p2 }
  0x3a   : > { %1628 = shalt.err (!%p1625_p10)
}
  0x3b   : > { %s2209_s1 = smov 128   ;;  %s252_s23 = scalar_lea.vmem [#allocation10], %s1884_s6 }
  0x3c   : > { %1473 = dma.hbm_to_vmem [thread:$0]  (!%p1891_p0), %s215_s26, 512, %s217_s5, %s205_s30, %s2209_s1, %s2209_s1, %s1775_s9  }
  0x3d   : > { %s260_s29 = sshll.u32 %s252_s23, 4  ;;  %s1777_s11 = smov [#allocation10]   ;;  %s261_s29 = int_to_ptr.vmem [resolvable:$true] %s260_s29 }
  0x3e   : > { %s1642_s25 = scalar_lea.vmem %s261_s29, 512  ;;  %s1647_s10 = sshll.u32 %s1777_s11, 4  ;;  %s1648_s10 = int_to_ptr.vmem [resolvable:$false] %s1647_s10 }
  0x3f   : > { %p1643_p13 = scmp.ne.s32.totalorder %s261_s29, %s1642_s25  ;;  %s1649_s12 = scalar_lea.vmem %s1648_s10, 1024 }
  0x40   : > { %p1650_p2 = scmp.lt.s32.totalorder %s261_s29, %s1648_s10  ;;  %p1651_p5 = scmp.lt.s32.totalorder %s1649_s12, %s1642_s25 }
  0x41   : > { %p1645_p12 = pnand %p1643_p13, %p1575_p3 }
  0x42   : > { %p1652_p6 = por %p1651_p5, %p1650_p2 }
  0x43   : > { %p1646_p1 = pneg %p1645_p12 }
  0x45   : > { %p1653_p7 = pnand %p1652_p6, %p1646_p1 }
  0x47   : > { %1656 = shalt.err (!%p1653_p7)
}
  0x48   : > { %1479 = dma.hbm_to_vmem [thread:$0]  (!%p1891_p0), %s259_s19, 512, %s261_s29, %s1903_s22, %s2209_s1, %s2209_s1, %s1775_s9  }
  0x49   : > { %272 = sbr.rel (%p1920_p4) target bundleno = 883 (0x373), region = 32  ;;  %s1961_s6 = sand.u32 (!%p1920_p4), 1, %s1755_s16  }
  0x4a   : > { %s1964_s8 = sshll.u32 (!%p1920_p4), %s1961_s6, 5  ;;  %s275_s26 = scalar_lea.sflag (!%p1920_p4), [#allocation6], %s1961_s6 }
  0x4b   : > { %s1968_s14 = scalar_lea.vmem (!%p1920_p4), [#allocation5], %s1964_s8 }
  0x4e   : > { %1734 = dma.done.wait (%p1864_p8), %s275_s26, 512  }
  0x4f   : > { %1736 = vsyncadd (%p1864_p8), %s275_s26, 4294966784  ;;  %s283_s19 = sand.u32 1, %s1844_s21   ;;  %s287_s22 = scalar_lea.vmem [#allocation8], %s1964_s8 }
  0x50   : > { %s284_s7 = scalar_lea.sflag [#allocation9], %s283_s19 }
  0x51   : > { %1738 = dma.done.wait (%p1864_p8), %s284_s7, 1024  }
  0x52   : > { %1740 = vsyncadd (%p1864_p8), %s284_s7, 4294966272  ;;  %vm354_vm0 = vcmask 261120   ;;  %v1778_v0 = vmov 0.0   ;;  %vm1779_vm1 = vmmov 0   ;;  %v363_v1 = vld [vmem:[%s287_s22] sm:$0xff]  ;;  %v364_v2 = vld [vmem:[%s287_s22 + $0x8] sm:$0xff] }
  0x53   : > { %1420 = vmatprep.subr.mxu0 %v1778_v0  ;;  %355 = vst.msk [vmem:[#allocation4] sm:$0xff] %vm354_vm0, %v1778_v0  ;;  %356 = vst.msk [vmem:[#allocation4 + $0x8] sm:$0xff] %vm354_vm0, %v1778_v0  ;;  %1425 = vmatprep.subr.mxu1 %v1778_v0  ;;  %v359_v3 = vld [vmem:[%s1968_s14] sm:$0xff]  ;;  %v360_v4 = vld [vmem:[%s1968_s14 + $0x8] sm:$0xff]  ;;  %vm345_vm2 = vcmask 7168   ;;  %v1780_v9 = vmov -inf  }
  0x54   : > { %357 = vst.msk [vmem:[#allocation4 + $0x10] sm:$0xff] %vm354_vm0, %v1778_v0  ;;  %358 = vst.msk [vmem:[#allocation4 + $0x18] sm:$0xff] %vm354_vm0, %v1778_v0  ;;  %1422 = vmatprep.mubr.msk.f32.mxu0 %vm1779_vm1, %v1778_v0  ;;  %1427 = vmatprep.mubr.msk.f32.mxu1 %vm1779_vm1, %v1778_v0  ;;  %v365_v5 = vld [vmem:[%s287_s22 + $0x10] sm:$0xff]  ;;  %v366_v6 = vld [vmem:[%s287_s22 + $0x18] sm:$0xff]  ;;  %s1378_s21 = sshll.u32 %s1961_s6, 2  ;;  %vm680_vm3 = vcmask 64519  }
  0x55   : > { %1421 = vmatpush3.xpose.msk.msra.mxu0 %vm354_vm0, %v363_v1  ;;  %1426 = vmatpush3.xpose.msk.msra.mxu1 %vm354_vm0, %v364_v2  ;;  %v361_v7 = vld [vmem:[%s1968_s14 + $0x10] sm:$0xff]  ;;  %v362_v8 = vld [vmem:[%s1968_s14 + $0x18] sm:$0xff]  ;;  %346 = vst.msk [vmem:[#allocation2] sm:$0xff] %vm345_vm2, %v1780_v9  ;;  %347 = vst.msk [vmem:[#allocation2 + $0x8] sm:$0xff] %vm345_vm2, %v1780_v9  ;;  %vm689_vm4 = vcmask 64512   ;;  %s2031_s27 = scalar_lea.vmem [#allocation12], %s1378_s21 }
  0x56   : > { %1430 = vmatprep.subr.mxu0 %v1778_v0  ;;  %1435 = vmatprep.subr.mxu1 %v1778_v0  ;;  %348 = vst.msk [vmem:[#allocation2 + $0x10] sm:$0xff] %vm345_vm2, %v1780_v9  ;;  %349 = vst.msk [vmem:[#allocation2 + $0x18] sm:$0xff] %vm345_vm2, %v1780_v9  ;;  %v1781_v26 = vmov 0   ;;  %s296_s9 = scalar_lea.vmem [#allocation10], %s1964_s8  ;;  %s1191_s13 = sshll.u32 %s2031_s27, 4  ;;  %s2091_s13 = int_to_ptr.vmem [resolvable:$true] %s1191_s13 }
  0x57   : > { %350 = vst.msk [vmem:[#allocation3] sm:$0xff] %vm345_vm2, %v1778_v0  ;;  %351 = vst.msk [vmem:[#allocation3 + $0x8] sm:$0xff] %vm345_vm2, %v1778_v0  ;;  %1547 = vset.pattern.permute.xlu0 %v1781_v26  ;;  %1548 = vset.pattern.permute.xlu1 %v1781_v26  ;;  %v367_v43 = vld [vmem:[%s296_s9] sm:$0xff]  ;;  %v368_v44 = vld [vmem:[%s296_s9 + $0x8] sm:$0xff]  ;;  %s1403_s24 = sshll.u32 %s1763_s18, 6  ;;  %s1160_s25 = scalar_lea.sflag [#allocation13], %s1961_s6 }
  0x58   : > { %1423 = vmatmul.mubr.msk.f32.vlgmr.msra.gmra.mxu0 %vm354_vm0, %v359_v3  ;;  %1428 = vmatmul.mubr.msk.f32.vlgmr.msra.gmra.mxu1 %vm354_vm0, %v360_v4  ;;  %352 = vst.msk [vmem:[#allocation3 + $0x10] sm:$0xff] %vm345_vm2, %v1778_v0  ;;  %353 = vst.msk [vmem:[#allocation3 + $0x18] sm:$0xff] %vm345_vm2, %v1778_v0  ;;  %v369_v57 = vld [vmem:[%s296_s9 + $0x10] sm:$0xff]  ;;  %v370_v60 = vld [vmem:[%s296_s9 + $0x18] sm:$0xff]  ;;  %s2097_s29 = scalar_lea.hbm %s2189_s4, %s1403_s24  ;;  %s1657_s11 = scalar_lea.vmem %s2091_s13, 64 }
  0x59   : > { %1431 = vmatpush3.xpose.msk.msra.mxu0 %vm354_vm0, %v365_v5  ;;  %1432 = vmatprep.mubr.msk.f32.mxu0 %vm1779_vm1, %v1778_v0  ;;  %p1658_p8 = scmp.ne.s32.totalorder %s2091_s13, %s1657_s11  ;;  %s1782_s10 = smov [#allocation12]  }
  0x5a   : > { %1436 = vmatpush3.xpose.msk.msra.mxu1 %vm354_vm0, %v366_v6  ;;  %1437 = vmatprep.mubr.msk.f32.mxu1 %vm1779_vm1, %v1778_v0  ;;  %s1661_s12 = sshll.u32 %s1782_s10, 4  ;;  %s1662_s12 = int_to_ptr.vmem [resolvable:$false] %s1661_s12 }
  0x5b   : > { %1440 = vmatprep.subr.mxu0 %v1778_v0  ;;  %1445 = vmatprep.subr.mxu1 %v1778_v0  ;;  %p1659_p0 = pnand %p1658_p8, %p1868_p9  ;;  %s1663_s30 = scalar_lea.vmem %s1662_s12, 128 }
  0x5c   : > { %1433 = vmatmul.mubr.msk.f32.vlgmr.msra.gmra.mxu0 %vm354_vm0, %v361_v7  ;;  %v2045_v27 = vld [vmem:[#allocation2] sm:$0xff]  ;;  %v686_v30 = vld [vmem:[#allocation2 + $0x8] sm:$0xff]  ;;  %p1664_p4 = scmp.lt.s32.totalorder %s2091_s13, %s1662_s12  ;;  %p1665_p10 = scmp.lt.s32.totalorder %s1663_s30, %s1657_s11 }
  0x5d   : > { %1438 = vmatmul.mubr.msk.f32.vlgmr.msra.gmra.mxu1 %vm354_vm0, %v362_v8  ;;  %1442 = vmatprep.mubr.msk.f32.mxu0 %vm1779_vm1, %v1778_v0  ;;  %v2050_v31 = vld [vmem:[#allocation2 + $0x10] sm:$0xff]  ;;  %v2060_v37 = vld [vmem:[#allocation2 + $0x18] sm:$0xff]  ;;  %p1660_p3 = pneg %p1659_p0 }
  0x5e   : > { %1447 = vmatprep.mubr.msk.f32.mxu1 %vm1779_vm1, %v1778_v0  ;;  %1441 = vmatpush3.msra.mxu0 %v367_v43  ;;  %v762_v9 = vld [vmem:[#allocation3] sm:$0xff]  ;;  %p1666_p13 = por %p1665_p10, %p1664_p4 }
  0x5f   : > { %1450 = vmatprep.subr.mxu0 %v1778_v0  ;;  %1446 = vmatpush3.msra.mxu1 %v368_v44 }
  0x60   : > { %1455 = vmatprep.subr.mxu1 %v1778_v0  ;;  %p1667_p12 = pnand %p1666_p13, %p1660_p3 }
 0x118   : > { %v444_v10 = vpop.f32.mrf.mxu0  ;;  %v520_v11 = vpop.f32.mrf.mxu1 }
 0x119   : > { %v676_v12 = vmul.f32 0.17677669, %v444_v10  ;;  %v677_v13 = vmul.f32 0.17677669, %v520_v11 }
 0x11a   : > { %v1424_v14 = vpop.f32.mrf.mxu0  ;;  %v1429_v15 = vpop.f32.mrf.mxu1 }
 0x11b   : > { %681 = vst.msk [vmem:[%s2031_s27 - $0x7] sm:$0x80] %vm680_vm3, %v676_v12  ;;  %682 = vst.msk [vmem:[%s2031_s27 - $0x6] sm:$0x80] %vm680_vm3, %v677_v13  ;;  %v690_v16 = vsel %vm689_vm4, %v676_v12, -inf  ;;  %v693_v19 = vsel %vm689_vm4, %v677_v13, -inf }
 0x11c   : > { %691 = vmax.xlane.f32.xlu0 %v690_v16  ;;  %v596_v17 = vpop.f32.mrf.mxu0 }
 0x11d   : > { %v678_v18 = vmul.f32 0.17677669, %v596_v17  ;;  %v672_v20 = vpop.f32.mrf.mxu1  ;;  %v764_v17 = vld [vmem:[#allocation3 + $0x10] sm:$0xff] }
 0x11e   : > { %v1434_v21 = vpop.f32.mrf.mxu0  ;;  %v679_v22 = vmul.f32 0.17677669, %v672_v20 }
 0x11f   : > { %683 = vst.msk [vmem:[%s2031_s27 - $0x5] sm:$0x80] %vm680_vm3, %v678_v18  ;;  %v1439_v23 = vpop.f32.mrf.mxu1  ;;  %v696_v24 = vsel %vm689_vm4, %v678_v18, -inf }
 0x120   : > { %694 = vmax.xlane.f32.xlu0 %v693_v19  ;;  %684 = vst.msk [vmem:[%s2031_s27 - $0x4] sm:$0x80] %vm680_vm3, %v679_v22  ;;  %697 = vmax.xlane.f32.xlu1 %v696_v24  ;;  %v699_v25 = vsel %vm689_vm4, %v679_v22, -inf }
 0x124   : > { %700 = vmax.xlane.f32.xlu1 %v699_v25 }
 0x1a5   : > { %v692_v28 = vpop.xlane.xlu0 %691 }
 0x1a6   : > { %v2048_v29 = vmax.f32 %v2045_v27, %v692_v28 }
 0x1a8   : > { %v706_v32 = vsub.f32 %v2045_v27, %v2048_v29  ;;  %1107 = vst.msk [vmem:[#allocation2] sm:$0xff] %vm345_vm2, %v2048_v29  ;;  %720 = vperm.xlu0 %1547, %v2048_v29  }
 0x1a9   : > { %v695_v33 = vpop.xlane.xlu0 %694  ;;  %v698_v34 = vpop.xlane.xlu1 %697 }
 0x1aa   : > { %v703_v35 = vmax.f32 %v686_v30, %v695_v33  ;;  %v2058_v36 = vmax.f32 %v2050_v31, %v698_v34  ;;  %v710_v4 = vmul.f32 1.442695, %v706_v32 }
 0x1ac   : > { %v707_v38 = vsub.f32 %v686_v30, %v703_v35  ;;  %1108 = vst.msk [vmem:[#allocation2 + $0x8] sm:$0xff] %vm345_vm2, %v703_v35  ;;  %725 = vperm.xlu1 %1548, %v703_v35   ;;  %v708_v39 = vsub.f32 %v2050_v31, %v2058_v36  ;;  %1109 = vst.msk [vmem:[#allocation2 + $0x10] sm:$0xff] %vm345_vm2, %v2058_v36 }
 0x1ad   : > { %v701_v40 = vpop.xlane.xlu1 %700 }
 0x1ae   : > { %v705_v41 = vmax.f32 %v2060_v37, %v701_v40  ;;  %v712_v2 = vmul.f32 1.442695, %v707_v38 }
 0x1b0   : > { %730 = vperm.xlu1 %1548, %v2058_v36   ;;  %v709_v42 = vsub.f32 %v2060_v37, %v705_v41  ;;  %1110 = vst.msk [vmem:[#allocation2 + $0x18] sm:$0xff] %vm345_vm2, %v705_v41 }
 0x1b2   : > { %v716_v8 = vmul.f32 1.442695, %v709_v42 }
 0x1b4   : > { %735 = vperm.xlu1 %1548, %v705_v41  }
 0x223   : > { %v721_v45 = vpop.permute.xlu0 %720 }
 0x224   : > { %v738_v46 = vsub.f32 %v676_v12, %v721_v45  ;;  %v763_v12 = vld [vmem:[#allocation3 + $0x8] sm:$0xff] }
 0x226   : > { %v742_v47 = vmul.f32 1.442695, %v738_v46 }
 0x227   : > { %v726_v48 = vpop.permute.xlu1 %725 }
 0x228   : > { %1549 = vpow2.f32 %v742_v47  ;;  %v739_v49 = vsub.f32 %v677_v13, %v726_v48 }
 0x22a   : > { %v744_v50 = vmul.f32 1.442695, %v739_v49 }
 0x22b   : > { %v731_v51 = vpop.permute.xlu1 %730 }
 0x22c   : > { %1551 = vpow2.f32 %v744_v50  ;;  %v740_v52 = vsub.f32 %v678_v18, %v731_v51 }
 0x22e   : > { %v746_v53 = vmul.f32 1.442695, %v740_v52 }
 0x22f   : > { %v736_v54 = vpop.permute.xlu1 %735 }
 0x230   : > { %1553 = vpow2.f32 %v746_v53  ;;  %v741_v55 = vsub.f32 %v679_v22, %v736_v54  ;;  %v765_v22 = vld [vmem:[#allocation3 + $0x18] sm:$0xff] }
 0x232   : > { %v748_v56 = vmul.f32 1.442695, %v741_v55 }
 0x234   : > { %1555 = vpow2.f32 %v748_v56 }
 0x235   : > { %v1550_v58 = vpop.eup %1549  ;;  %1557 = vpow2.f32 %v712_v2 }
 0x236   : > { %1443 = vmatmul.mubr.msk.f32.vlgmr.msra.gmra.mxu0 %vm689_vm4, %v1550_v58  ;;  %v750_v59 = vsel %vm689_vm4, %v1550_v58, 0.0  ;;  %1559 = vpow2.f32 %v710_v4 }
 0x237   : > { %751 = vadd.xlane.f32.xlu1 %v750_v59  ;;  %1451 = vmatpush3.msra.mxu0 %v369_v57 }
 0x238   : > { %1452 = vmatprep.mubr.msk.f32.mxu0 %vm1779_vm1, %v1778_v0 }
 0x239   : > { %v1552_v61 = vpop.eup %1551 }
 0x23a   : > { %1448 = vmatmul.mubr.msk.f32.vlgmr.msra.gmra.mxu1 %vm689_vm4, %v1552_v61  ;;  %v753_v62 = vsel %vm689_vm4, %v1552_v61, 0.0 }
 0x23b   : > { %754 = vadd.xlane.f32.xlu0 %v753_v62  ;;  %1456 = vmatpush3.msra.mxu1 %v370_v60 }
 0x23c   : > { %1457 = vmatprep.mubr.msk.f32.mxu1 %vm1779_vm1, %v1778_v0  ;;  %v714_v0 = vmul.f32 1.442695, %v708_v39 }
 0x23d   : > { %v1554_v63 = vpop.eup %1553 }
 0x23e   : > { %1453 = vmatmul.mubr.msk.f32.vlgmr.msra.gmra.mxu0 %vm689_vm4, %v1554_v63  ;;  %v756_v1 = vsel %vm689_vm4, %v1554_v63, 0.0  ;;  %1561 = vpow2.f32 %v714_v0 }
 0x23f   : > { %757 = vadd.xlane.f32.xlu1 %v756_v1  ;;  %1563 = vpow2.f32 %v716_v8 }
 0x241   : > { %v1556_v3 = vpop.eup %1555 }
 0x242   : > { %1458 = vmatmul.mubr.msk.f32.vlgmr.msra.gmra.mxu1 %vm689_vm4, %v1556_v3  ;;  %v759_v5 = vsel %vm689_vm4, %v1556_v3, 0.0  ;;  %v1558_v6 = vpop.eup %1557 }
 0x243   : > { %760 = vadd.xlane.f32.xlu1 %v759_v5  ;;  %v1560_v7 = vpop.eup %1559  ;;  %v767_v14 = vmul.f32 %v1558_v6, %v763_v12 }
 0x244   : > { %v766_v10 = vmul.f32 %v1560_v7, %v762_v9 }
 0x24b   : > { %v1562_v15 = vpop.eup %1561 }
 0x24c   : > { %v768_v19 = vmul.f32 %v1562_v15, %v764_v17  ;;  %v1564_v20 = vpop.eup %1563 }
 0x24d   : > { %v769_v25 = vmul.f32 %v1564_v20, %v765_v22 }
 0x251   : > { %790 = vperm.xlu0 %1547, %v1558_v6  }
 0x254   : > { %785 = vperm.xlu1 %1548, %v1560_v7  }
 0x2c0   : > { %v752_v11 = vpop.xlane.xlu1 %751 }
 0x2c1   : > { %v770_v13 = vadd.f32 %v766_v10, %v752_v11 }
 0x2c3   : > { %775 = vst.msk [vmem:[#allocation3] sm:$0xff] %vm345_vm2, %v770_v13 }
 0x2c4   : > { %v755_v16 = vpop.xlane.xlu0 %754 }
 0x2c5   : > { %v771_v18 = vadd.f32 %v767_v14, %v755_v16 }
 0x2c7   : > { %776 = vst.msk [vmem:[#allocation3 + $0x8] sm:$0xff] %vm345_vm2, %v771_v18 }
 0x2c8   : > { %v758_v21 = vpop.xlane.xlu1 %757 }
 0x2c9   : > { %v772_v23 = vadd.f32 %v768_v19, %v758_v21 }
 0x2ca   : > { %v1118_v24 = vld [vmem:[#allocation3] sm:$0xff] }
 0x2cb   : > { %777 = vst.msk [vmem:[#allocation3 + $0x10] sm:$0xff] %vm345_vm2, %v772_v23  ;;  %1124 = vperm.xlu1 %1548, %v1118_v24  }
 0x2cc   : > { %v761_v26 = vpop.xlane.xlu1 %760 }
 0x2cd   : > { %v773_v27 = vadd.f32 %v769_v25, %v761_v26 }
 0x2ce   : > { %v1119_v28 = vld [vmem:[#allocation3 + $0x8] sm:$0xff] }
 0x2cf   : > { %778 = vst.msk [vmem:[#allocation3 + $0x18] sm:$0xff] %vm345_vm2, %v773_v27  ;;  %1129 = vperm.xlu0 %1547, %v1119_v28  }
 0x2d2   : > { %v1120_v29 = vld [vmem:[#allocation3 + $0x10] sm:$0xff] }
 0x2d3   : > { %800 = vperm.xlu0 %1547, %v1564_v20   ;;  %1134 = vperm.xlu1 %1548, %v1120_v29  }
 0x2d6   : > { %v1121_v30 = vld [vmem:[#allocation3 + $0x18] sm:$0xff] }
 0x2d7   : > { %1139 = vperm.xlu1 %1548, %v1121_v30  }
 0x2db   : > { %795 = vperm.xlu1 %1548, %v1562_v15  }
 0x2dc   : > { %1670 = shalt.err (!%p1667_p12)
}
 0x2dd   : > { %s1671_s5 = scalar_lea.hbm %s2097_s29, 64  ;;  %s1675_s19 = scalar_lea.hbm %s2189_s4, 128 }
 0x2de   : > { %p1672_p1 = scmp.ne.s32.totalorder %s2097_s29, %s1671_s5  ;;  %p1676_p6 = scmp.lt.s32.totalorder %s2097_s29, %s2189_s4 }
 0x2df   : > { %p1677_p7 = scmp.lt.s32.totalorder %s1675_s19, %s1671_s5 }
 0x2e0   : > { %p1673_p2 = pnand %p1672_p1, %p1868_p9 }
 0x2e1   : > { %p1678_p8 = por %p1677_p7, %p1676_p6 }
 0x2e2   : > { %p1674_p5 = pneg %p1673_p2 }
 0x2e4   : > { %p1679_p0 = pnand %p1678_p8, %p1674_p5 }
 0x2e6   : > { %1682 = shalt.err (!%p1679_p0)
}
 0x2e7   : > { %s1783_s21 = smov 16   ;;  %s1784_s27 = smov 1   ;;  %v779_v31 = vld [vmem:[#allocation4] sm:$0xff]  ;;  %v786_v32 = vpop.permute.xlu1 %785  ;;  %v780_v34 = vld [vmem:[#allocation4 + $0x8] sm:$0xff]  ;;  %v791_v35 = vpop.permute.xlu0 %790  ;;  %v782_v49 = vld [vmem:[#allocation4 + $0x18] sm:$0xff] }
 0x2e8   : > { %1467 = dma.vmem_to_hbm [thread:$0]  (%p1868_p9), %s2091_s13, 64, %s2097_s29, %s1160_s25, %s1783_s21, %s1783_s21, %s1784_s27   ;;  %v803_v33 = vmul.f32 %v786_v32, %v779_v31  ;;  %v804_v39 = vmul.f32 %v791_v35, %v780_v34  ;;  %v781_v57 = vld [vmem:[#allocation4 + $0x10] sm:$0xff] }
 0x2e9   : > { %s328_s9 = scalar_lea.vmem [#allocation11], %s1964_s8  ;;  %s1402_s13 = sshll.u32 %s1763_s18, 9 }
 0x2ea   : > { %s1174_s24 = sshll.u32 %s328_s9, 4  ;;  %s2133_s23 = scalar_lea.hbm %s2188_s3, %s1402_s13  ;;  %s2135_s24 = int_to_ptr.vmem [resolvable:$true] %s1174_s24 }
 0x2eb   : > { %s1155_s18 = scalar_lea.sflag [#allocation7], %s1961_s6  ;;  %s1683_s29 = scalar_lea.vmem %s2135_s24, 512 }
 0x2ec   : > { %p1684_p3 = scmp.ne.s32.totalorder %s2135_s24, %s1683_s29  ;;  %s1785_s25 = smov [#allocation11]  }
 0x2ed   : > { %s1687_s11 = sshll.u32 %s1785_s25, 4  ;;  %s1688_s11 = int_to_ptr.vmem [resolvable:$false] %s1687_s11 }
 0x2ee   : > { %p1685_p4 = pnand %p1684_p3, %p1868_p9  ;;  %s1689_s10 = scalar_lea.vmem %s1688_s11, 1024 }
 0x2ef   : > { %p1690_p13 = scmp.lt.s32.totalorder %s2135_s24, %s1688_s11  ;;  %p1691_p12 = scmp.lt.s32.totalorder %s1689_s10, %s1683_s29 }
 0x2f0   : > { %p1686_p10 = pneg %p1685_p4 }
 0x2f1   : > { %p1692_p1 = por %p1691_p12, %p1690_p13 }
 0x2f3   : > { %p1693_p2 = pnand %p1692_p1, %p1686_p10 }
 0x2f6   : > { %v876_v36 = vpop.f32.mrf.mxu0 }
 0x2f7   : > { %v1099_v37 = vadd.f32 %v876_v36, %v803_v33 }
 0x2f8   : > { %v1444_v38 = vpop.f32.mrf.mxu0 }
 0x2f9   : > { %1103 = vst.msk [vmem:[#allocation4] sm:$0xff] %vm354_vm0, %v1099_v37 }
 0x2fa   : > { %v949_v40 = vpop.f32.mrf.mxu1 }
 0x2fb   : > { %v1100_v41 = vadd.f32 %v949_v40, %v804_v39 }
 0x2fc   : > { %v1449_v42 = vpop.f32.mrf.mxu1 }
 0x2fd   : > { %1104 = vst.msk [vmem:[#allocation4 + $0x8] sm:$0xff] %vm354_vm0, %v1100_v41 }
 0x2fe   : > { %v1022_v43 = vpop.f32.mrf.mxu0 }
 0x300   : > { %v1454_v44 = vpop.f32.mrf.mxu0  ;;  %v1114_v56 = vld [vmem:[#allocation4] sm:$0xff] }
 0x302   : > { %v1095_v45 = vpop.f32.mrf.mxu1 }
 0x304   : > { %v1459_v46 = vpop.f32.mrf.mxu1  ;;  %v1115_v62 = vld [vmem:[#allocation4 + $0x8] sm:$0xff] }
 0x346   : > { %v1125_v47 = vpop.permute.xlu1 %1124 }
 0x347   : > { %1565 = vrcp.f32 %v1125_v47 }
 0x34a   : > { %v1130_v48 = vpop.permute.xlu0 %1129 }
 0x34b   : > { %1567 = vrcp.f32 %v1130_v48 }
 0x34e   : > { %v801_v50 = vpop.permute.xlu0 %800  ;;  %v1135_v51 = vpop.permute.xlu1 %1134 }
 0x34f   : > { %v806_v52 = vmul.f32 %v801_v50, %v782_v49 }
 0x351   : > { %v1102_v53 = vadd.f32 %v1095_v45, %v806_v52 }
 0x352   : > { %v1140_v54 = vpop.permute.xlu1 %1139 }
 0x353   : > { %1106 = vst.msk [vmem:[#allocation4 + $0x18] sm:$0xff] %vm354_vm0, %v1102_v53  ;;  %1569 = vrcp.f32 %v1140_v54 }
 0x354   : > { %v1566_v55 = vpop.eup %1565  ;;  %1571 = vrcp.f32 %v1135_v51 }
 0x355   : > { %v1143_v58 = vmul.f32 %v1566_v55, %v1114_v56 }
 0x356   : > { %v796_v59 = vpop.permute.xlu1 %795 }
 0x357   : > { %1150 = vst.msk [vmem:[%s328_s9] sm:$0xff] %vm354_vm0, %v1143_v58  ;;  %v805_v60 = vmul.f32 %v796_v59, %v781_v57 }
 0x358   : > { %v1568_v61 = vpop.eup %1567 }
 0x359   : > { %v1145_v63 = vmul.f32 %v1568_v61, %v1115_v62  ;;  %v1101_v1 = vadd.f32 %v1022_v43, %v805_v60 }
 0x35a   : > { %v1117_v3 = vld [vmem:[#allocation4 + $0x18] sm:$0xff] }
 0x35b   : > { %1151 = vst.msk [vmem:[%s328_s9 + $0x8] sm:$0xff] %vm354_vm0, %v1145_v63  ;;  %1105 = vst.msk [vmem:[#allocation4 + $0x10] sm:$0xff] %vm354_vm0, %v1101_v1 }
 0x360   : > { %v1570_v2 = vpop.eup %1569 }
 0x361   : > { %v1149_v4 = vmul.f32 %v1570_v2, %v1117_v3  ;;  %v1572_v5 = vpop.eup %1571 }
 0x362   : > { %v1116_v6 = vld [vmem:[#allocation4 + $0x10] sm:$0xff] }
 0x363   : > { %1153 = vst.msk [vmem:[%s328_s9 + $0x18] sm:$0xff] %vm354_vm0, %v1149_v4  ;;  %v1147_v7 = vmul.f32 %v1572_v5, %v1116_v6 }
 0x365   : > { %1152 = vst.msk [vmem:[%s328_s9 + $0x10] sm:$0xff] %vm354_vm0, %v1147_v7 }
 0x366   : > { %1696 = shalt.err (!%p1693_p2)
}
 0x367   : > { %s1697_s12 = scalar_lea.hbm %s2133_s23, 512  ;;  %s1701_s26 = scalar_lea.hbm %s2188_s3, 1024 }
 0x368   : > { %p1698_p5 = scmp.ne.s32.totalorder %s2133_s23, %s1697_s12  ;;  %p1702_p8 = scmp.lt.s32.totalorder %s2133_s23, %s2188_s3 }
 0x369   : > { %p1703_p0 = scmp.lt.s32.totalorder %s1701_s26, %s1697_s12 }
 0x36a   : > { %p1699_p6 = pnand %p1698_p5, %p1868_p9 }
 0x36b   : > { %p1704_p3 = por %p1703_p0, %p1702_p8 }
 0x36c   : > { %p1700_p7 = pneg %p1699_p6 }
 0x36e   : > { %p1705_p4 = pnand %p1704_p3, %p1700_p7 }
 0x370   : > { %1708 = shalt.err (!%p1705_p4)
}
 0x371   : > { %s1786_s7 = smov 128   ;;  %s1787_s22 = smov 8  }
 0x372   : > { %1466 = dma.vmem_to_hbm [thread:$0]  (%p1868_p9), %s2135_s24, 512, %s2133_s23, %s1155_s18, %s1786_s7, %s1786_s7, %s1787_s22  }
 0x373 PF: > { %s1206_s27 = sand.u32 1, %s1751_s15   ;;  %p2211_p10 = scmp.ge.s32.totalorder %s1771_s20, 2 }
 0x374   : > { %s1207_s9 = scalar_lea.sflag [#allocation7], %s1206_s27 }
 0x375   : > { %p1481_p13 = pnand %p2211_p10, %p1875_p11 }
 0x377   : > { %p1482_p12 = pneg %p1481_p13 }
 0x379   : > { %1742 = dma.done.wait (%p1482_p12), %s1207_s9, 512  }
 0x37a   : > { %1744 = vsyncadd (%p1482_p12), %s1207_s9, 4294966784  ;;  %s1216_s13 = scalar_lea.sflag [#allocation13], %s1206_s27 }
 0x37b   : > { %1746 = dma.done.wait (%p1482_p12), %s1216_s13, 64  }
 0x37c   : > { %1748 = vsyncadd (%p1482_p12), %s1216_s13, 4294967232  ;;  %s27_s20 = sadd.s32 1, %s1771_s20   ;;  %s2212_s28 = sld [smem:[#allocation20_spill]] }
 0x37d   : > { %p24_p1 = scmp.ge.s32.totalorder %s27_s20, 4   ;;  %s2213_s18 = sld [smem:[#allocation18_spill]] }
 0x37e   : > { %s2214_s19 = sld [smem:[#allocation19_spill]]  ;;  %s2215_s15 = smov %s1755_s16 }
 0x37f   : > { %s2216_s16 = smov %s1759_s17  ;;  %26 = sbr.rel (!%p24_p1) target bundleno = 12 (0xc), region = 126 }
 0x382   : > { %s2217_s17 = smov %s2212_s28 }
 0x384   :  { %1221 = vsyncpa [#allocation6], 1 }
 0x385   :  { %1223 = vsyncpa [#allocation6 + $0x1], 1 }
 0x386   :  { %1224 = vsyncpa [#allocation9], 1 }
 0x387   :  { %1226 = vsyncpa [#allocation9 + $0x1], 1 }
 0x388   :  { %1227 = vsyncpa [#allocation7], 1 }
 0x389   :  { %1229 = vsyncpa [#allocation7 + $0x1], 1 }
 0x38a   :  { %1230 = vsyncpa [#allocation13], 1 }
 0x38b   :  { %1232 = vsyncpa [#allocation13 + $0x1], 1 }

</bundles_post_ra>
